<compile_context>
chip_gen: v5e
topology: v5e:2x2
jax: 0.10.0
libtpu: 0.0.40
codegen_flags: <defaults>
</compile_context>

<pallas_src>
import jax
import jax.numpy as jnp
from jax.experimental import pallas as pl
from jax.experimental.pallas import tpu as pltpu


def _policy_net_kernel(xT_ref, w1T_ref, b1_ref, w2T_ref, b2_ref, outT_ref):
    # Transposed, batch-on-lanes layout:
    #   xT_ref:  (S, TB)   w1T_ref: (H, S)   b1_ref: (H, 1)
    #   w2T_ref: (A, H)    b2_ref:  (A, 1)   outT_ref: (A, TB)
    xT = xT_ref[...]

    # fc1 + ReLU: (H,S) @ (S,TB) -> (H,TB).  MXU N-dim = TB (lane-dense),
    # f32 accumulation.  If inputs ever arrive as bf16, keep the f32
    # preferred_element_type; do NOT add a wrapper-side f32->bf16 cast.
    h = jnp.dot(w1T_ref[...], xT, preferred_element_type=jnp.float32) + b1_ref[...]
    h = jnp.maximum(h, 0.0)

    # fc2: (A,H) @ (H,TB) -> (A,TB)
    logits = jnp.dot(w2T_ref[...], h, preferred_element_type=jnp.float32) + b2_ref[...]

    # Numerically stable softmax over actions = axis 0 (per batch column).
    m = jnp.max(logits, axis=0, keepdims=True)      # (1, TB)
    e = jnp.exp(logits - m)
    denom = jnp.sum(e, axis=0, keepdims=True)       # (1, TB)
    # Exact reciprocal: approx=True (EUP vrcp) would not reliably hold 1e-5.
    outT_ref[...] = (e * pl.reciprocal(denom, approx=False)).astype(outT_ref.dtype)


def _forward_single_block(xT, w1T, b1c, w2T, b2c):
    """Small/medium-batch path: one kernel invocation, no grid, no pipeline."""
    B = xT.shape[1]
    A = w2T.shape[0]
    vmem = lambda: pl.BlockSpec(memory_space=pltpu.MemorySpace.VMEM)
    return pl.pallas_call(
        _policy_net_kernel,
        out_shape=jax.ShapeDtypeStruct((A, B), jnp.float32),
        in_specs=[vmem(), vmem(), vmem(), vmem(), vmem()],
        out_specs=vmem(),
    )(xT, w1T, b1c, w2T, b2c)


def _forward_batch_tiled(xT, w1T, b1c, w2T, b2c, batch_tile):
    """Throughput path: tile over the (lane) batch axis, weights VMEM-resident.

    No explicit padding: Pallas handles the uneven last block (padded reads,
    dropped OOB writes); compute is per-column so tail garbage stays contained.
    """
    S, B = xT.shape
    H = w1T.shape[0]
    A = w2T.shape[0]
    n_tiles = pl.cdiv(B, batch_tile)

    return pl.pallas_call(
        _policy_net_kernel,
        out_shape=jax.ShapeDtypeStruct((A, B), jnp.float32),
        grid=(n_tiles,),
        in_specs=[
            pl.BlockSpec((S, batch_tile), lambda i: (0, i)),
            # Weights/biases: same block for every batch tile -> stay resident.
            pl.BlockSpec((H, S), lambda i: (0, 0)),
            pl.BlockSpec((H, 1), lambda i: (0, 0)),
            pl.BlockSpec((A, H), lambda i: (0, 0)),
            pl.BlockSpec((A, 1), lambda i: (0, 0)),
        ],
        out_specs=pl.BlockSpec((A, batch_tile), lambda i: (0, i)),
        compiler_params=pltpu.CompilerParams(
            dimension_semantics=("parallel",)),  # lets v7x split batch over 2 TCs
    )(xT, w1T, b1c, w2T, b2c)


def policy_net_forward(x, w1, b1, w2, b2, *, batch_tile=1024, single_block_rows=8192):
    """PolicyNet forward: softmax(relu(x @ w1 + b1) @ w2 + b2, axis=1).

    x: (B, state_dim); w1: (state_dim, hidden); b1: (1, hidden);
    w2: (hidden, actions); b2: (1, actions).  Returns (B, actions).
    """
    assert batch_tile % 128 == 0, "batch_tile is the lane dim -> multiple of 128"
    B = x.shape[0]

    # Wrapper-side layout plumbing: put batch on the lane (last) axis.
    xT = x.T                    # (S, B)
    w1T = w1.T                  # (H, S)
    w2T = w2.T                  # (A, H)
    b1c = b1.reshape(-1, 1)     # (H, 1)
    b2c = b2.reshape(-1, 1)     # (A, 1)

    if B <= max(single_block_rows, batch_tile):
        outT = _forward_single_block(xT, w1T, b1c, w2T, b2c)
    else:
        outT = _forward_batch_tiled(xT, w1T, b1c, w2T, b2c, batch_tile)
    return outT.T               # (B, A)


def init_params(key, state_dim, action_num, hidden_dim):
    # Deterministic init mimicking nn.Linear's uniform(-1/sqrt(fan_in), +1/sqrt(fan_in)).
    k1, k2, k3, k4 = jax.random.split(key, 4)
    bound1 = 1.0 / jnp.sqrt(state_dim)
    bound2 = 1.0 / jnp.sqrt(hidden_dim)
    w1 = jax.random.uniform(k1, (state_dim, hidden_dim), jnp.float32, -bound1, bound1)
    b1 = jax.random.uniform(k2, (1, hidden_dim), jnp.float32, -bound1, bound1)
    w2 = jax.random.uniform(k3, (hidden_dim, action_num), jnp.float32, -bound2, bound2)
    b2 = jax.random.uniform(k4, (1, action_num), jnp.float32, -bound2, bound2)
    return w1, b1, w2, b2


if __name__ == "__main__":
    # Shapes consistent with the module: state_dim=16, hidden_dim=32, action_num=8.
    batch, state_dim, hidden_dim, action_num = 2, 16, 32, 8

    key = jax.random.PRNGKey(0)
    kx, kp, kx_big = jax.random.split(key, 3)
    x = jax.random.normal(kx, (batch, state_dim), jnp.float32)
    w1, b1, w2, b2 = init_params(kp, state_dim, action_num, hidden_dim)

    def ref_forward(xv):
        h = jnp.maximum(xv @ w1 + b1, 0.0)
        return jax.nn.softmax(h @ w2 + b2, axis=1)

    # 1) Small-batch path (single no-grid invocation, batch-on-lanes layout).
    out = jax.block_until_ready(policy_net_forward(x, w1, b1, w2, b2))
    assert out.shape == (batch, action_num)
    assert jnp.allclose(out, ref_forward(x), atol=1e-5, rtol=1e-4)
    assert jnp.allclose(jnp.sum(out, axis=1), 1.0, atol=1e-5)

    # 2) Batch-tiled path (weights VMEM-resident, batch axis "parallel").
    #    2500 is deliberately not a multiple of the 1024 tile to exercise the
    #    unpadded ragged last block; single_block_rows=0 forces the tiled path.
    big_batch = 2500
    xb = jax.random.normal(kx_big, (big_batch, state_dim), jnp.float32)
    out_b = jax.block_until_ready(
        policy_net_forward(xb, w1, b1, w2, b2, batch_tile=1024, single_block_rows=0))
    assert out_b.shape == (big_batch, action_num)
    assert jnp.allclose(out_b, ref_forward(xb), atol=1e-5, rtol=1e-4)
    assert jnp.allclose(jnp.sum(out_b, axis=1), 1.0, atol=1e-5)

    print("KERNEL_OK")
</pallas_src>

<mosaic_0001>
module attributes {stable_mosaic.version = 11 : i64} {
  func.func @_policy_net_kernel(%arg0: memref<16x2xf32, #tpu.memory_space<vmem>>, %arg1: memref<32x16xf32, #tpu.memory_space<vmem>>, %arg2: memref<32x1xf32, #tpu.memory_space<vmem>>, %arg3: memref<8x32xf32, #tpu.memory_space<vmem>>, %arg4: memref<8x1xf32, #tpu.memory_space<vmem>>, %arg5: memref<8x2xf32, #tpu.memory_space<vmem>>) attributes {dimension_semantics = [], scalar_prefetch = 0 : i64, scratch_operands = 0 : i64, tpu.core_type = #tpu.core_type<tc>} {
    %c0 = arith.constant 0 : index
    %c0_0 = arith.constant 0 : index
    %0 = vector.load %arg0[%c0, %c0_0] : memref<16x2xf32, #tpu.memory_space<vmem>>, vector<16x2xf32>
    %c0_1 = arith.constant 0 : index
    %c0_2 = arith.constant 0 : index
    %1 = vector.load %arg1[%c0_1, %c0_2] : memref<32x16xf32, #tpu.memory_space<vmem>>, vector<32x16xf32>
    %cst = arith.constant dense<0.000000e+00> : vector<32x2xf32>
    %2 = tpu.matmul %1, %0, %cst {dimension_numbers = #tpu.dot_dimension_numbers<[1], [0], [0], [1], [0, 0, 1, 1], [], []>} : vector<32x16xf32>, vector<16x2xf32>, vector<32x2xf32> -> vector<32x2xf32>
    %c0_3 = arith.constant 0 : index
    %c0_4 = arith.constant 0 : index
    %3 = vector.load %arg2[%c0_3, %c0_4] : memref<32x1xf32, #tpu.memory_space<vmem>>, vector<32x1xf32>
    %4 = vector.broadcast %3 : vector<32x1xf32> to vector<32x2xf32>
    %5 = arith.addf %2, %4 : vector<32x2xf32>
    %cst_5 = arith.constant 0.000000e+00 : f32
    %6 = vector.broadcast %cst_5 : f32 to vector<32x2xf32>
    %7 = arith.maximumf %5, %6 : vector<32x2xf32>
    %c0_6 = arith.constant 0 : index
    %c0_7 = arith.constant 0 : index
    %8 = vector.load %arg3[%c0_6, %c0_7] : memref<8x32xf32, #tpu.memory_space<vmem>>, vector<8x32xf32>
    %cst_8 = arith.constant dense<0.000000e+00> : vector<8x2xf32>
    %9 = tpu.matmul %8, %7, %cst_8 {dimension_numbers = #tpu.dot_dimension_numbers<[1], [0], [0], [1], [0, 0, 1, 1], [], []>} : vector<8x32xf32>, vector<32x2xf32>, vector<8x2xf32> -> vector<8x2xf32>
    %c0_9 = arith.constant 0 : index
    %c0_10 = arith.constant 0 : index
    %10 = vector.load %arg4[%c0_9, %c0_10] : memref<8x1xf32, #tpu.memory_space<vmem>>, vector<8x1xf32>
    %11 = vector.broadcast %10 : vector<8x1xf32> to vector<8x2xf32>
    %12 = arith.addf %9, %11 : vector<8x2xf32>
    %cst_11 = arith.constant dense<0xFF800000> : vector<2xf32>
    %13 = vector.multi_reduction <maximumf>, %12, %cst_11 [0] : vector<8x2xf32> to vector<2xf32>
    %14 = vector.shape_cast %13 : vector<2xf32> to vector<1x2xf32>
    %15 = vector.broadcast %14 : vector<1x2xf32> to vector<8x2xf32>
    %16 = arith.subf %12, %15 : vector<8x2xf32>
    %17 = math.exp %16 : vector<8x2xf32>
    %cst_12 = arith.constant dense<0.000000e+00> : vector<2xf32>
    %18 = vector.multi_reduction <add>, %17, %cst_12 [0] : vector<8x2xf32> to vector<2xf32>
    %19 = vector.shape_cast %18 : vector<2xf32> to vector<1x2xf32>
    %20 = tpu.reciprocal %19 : vector<1x2xf32> -> vector<1x2xf32>
    %21 = vector.broadcast %20 : vector<1x2xf32> to vector<8x2xf32>
    %22 = arith.mulf %17, %21 : vector<8x2xf32>
    %c0_13 = arith.constant 0 : index
    %c0_14 = arith.constant 0 : index
    %23 = vector.load %arg5[%c0_13, %c0_14] : memref<8x2xf32, #tpu.memory_space<vmem>>, vector<8x2xf32>
    tpu.vector_store %arg5[%c0_13, %c0_14], %22 {strides = array<i32>} : memref<8x2xf32, #tpu.memory_space<vmem>>, vector<8x2xf32>,
    return
  }
}

</mosaic_0001>

<bundles_post_ra>
// kernel: tpu_custom_call.1
= control target key start
LH: loop header
LB: loop body
LE: loop exit
PB: predicated region body
PF: predicated region fallthrough
CT: control target
= control target key end

     0   :  { %v182_v2 = vmov 0   ;;  %vm50_vm0 = vcmask 130048   ;;  %vm103_vm1 = vcmask 261120   ;;  %vm127_vm2 = vcmask 15360   ;;  %s259_s0 = inlined_call_operand.vmem [shape: f32[16,2], index: 0, kind: input, shape index: {}]   ;;  %s260_s1 = inlined_call_operand.vmem [shape: f32[32,16], index: 1, kind: input, shape index: {}]   ;;  %s261_s2 = inlined_call_operand.vmem [shape: f32[32,1], index: 2, kind: input, shape index: {}]   ;;  %s262_s4 = inlined_call_operand.vmem [shape: f32[8,1], index: 4, kind: input, shape index: {}]   ;;  %s263_s3 = inlined_call_operand.vmem [shape: f32[8,32], index: 3, kind: input, shape index: {}]   ;;  %s264_s5 = inlined_call_operand.vmem [shape: f32[8,2], index: 5, kind: output, shape index: {}]  }
   0x1   :  { %v21_v0 = vld [vmem:[%s259_s0 + $0x8] sm:$0xff]  ;;  %v20_v1 = vld [vmem:[%s259_s0] sm:$0xff]  ;;  %175 = vset.pattern.permute.xlu0 %v182_v2  ;;  %176 = vset.pattern.permute.xlu1 %v182_v2  ;;  %v25_v4 = vld [vmem:[%s260_s1 + $0x18] sm:$0xff] }
   0x2   :  { %170 = vmatpush.msra.mxu2 %v21_v0  ;;  %171 = vmatpush.msra.mxu3 %v21_v0  ;;  %v23_v3 = vld [vmem:[%s260_s1 + $0x8] sm:$0xff]  ;;  %v29_v5 = vld [vmem:[%s261_s2 + $0x18] sm:$0xff]  ;;  %v22_v7 = vld [vmem:[%s260_s1] sm:$0xff] }
   0x3   :  { %77 = vmatpush.msra.mxu0 %v21_v0  ;;  %47 = vperm.xlu0 %175, %v29_v5   ;;  %v27_v6 = vld [vmem:[%s261_s2 + $0x8] sm:$0xff]  ;;  %v28_v8 = vld [vmem:[%s261_s2 + $0x10] sm:$0xff]  ;;  %v26_v10 = vld [vmem:[%s261_s2] sm:$0xff] }
   0x4   :  { %172 = vmatpush.msra.mxu2 %v20_v1  ;;  %173 = vmatpush.msra.mxu3 %v20_v1  ;;  %v24_v9 = vld [vmem:[%s260_s1 + $0x10] sm:$0xff]  ;;  %v97_v11 = vld [vmem:[%s262_s4] sm:$0xff] }
   0x5   :  { %166 = vmatmul.msk.f32.vlgmr.msra.gmra.mxu2 %vm50_vm0, %v23_v3  ;;  %168 = vmatmul.msk.f32.vlgmr.msra.gmra.mxu3 %vm50_vm0, %v25_v4  ;;  %v96_v28 = vld [vmem:[%s263_s3] sm:$0xff] }
   0x6   :  { %78 = vmatpush.msra.mxu0 %v20_v1  ;;  %37 = vperm.xlu1 %176, %v27_v6  }
   0x7   :  { %165 = vmatmul.msk.f32.vlgmr.msra.gmra.mxu0 %vm50_vm0, %v22_v7  ;;  %177 = vset.pattern.permute.xlu2 %v182_v2 }
   0x8   :  { %100 = vperm.xlu2 %177, %v97_v11  }
   0xb   :  { %42 = vperm.xlu0 %175, %v28_v8  }
   0xd   :  { %167 = vmatmul.msk.f32.gmra.mxu2 %vm50_vm0, %v24_v9 }
   0xe   :  { %32 = vperm.xlu1 %176, %v26_v10  }
  0x62   :  { %v101_v29 = vpop.permute.xlu2 %100 }
  0x75   :  { %v48_v12 = vpop.permute.xlu0 %47 }
  0x78   :  { %v38_v13 = vpop.permute.xlu1 %37 }
  0x7d   :  { %v43_v18 = vpop.permute.xlu0 %42 }
  0x80   :  { %v33_v19 = vpop.permute.xlu1 %32 }
  0x84   :  { %v80_v20 = vpop.f32.mrf.mxu0 }
  0x85   :  { %v81_v24 = vadd.f32 %v80_v20, %v33_v19 }
  0x87   :  { %v92_v27 = vmax.f32 %v81_v24, 0.0 }
  0x88   :  { %v83_v14 = vpop.f32.mrf.mxu2  ;;  %v89_v15 = vpop.f32.mrf.mxu3 }
  0x89   :  { %v90_v16 = vadd.f32 %v89_v15, %v48_v12  ;;  %v84_v22 = vadd.f32 %v83_v14, %v38_v13 }
  0x8b   :  { %v95_v17 = vmax.f32 %v90_v16, 0.0  ;;  %v93_v26 = vmax.f32 %v84_v22, 0.0 }
  0x8d   :  { %119 = vmatpush.msra.mxu1 %v95_v17 }
  0x90   :  { %v86_v21 = vpop.f32.mrf.mxu2 }
  0x91   :  { %v87_v23 = vadd.f32 %v86_v21, %v43_v18 }
  0x93   :  { %v94_v25 = vmax.f32 %v87_v23, 0.0 }
  0x95   :  { %120 = vmatpush.msra.mxu1 %v94_v25 }
  0x97   :  { %121 = vmatpush.msra.mxu1 %v93_v26 }
  0x99   :  { %122 = vmatpush.msra.mxu1 %v92_v27 }
  0x9a   :  { %169 = vmatmul.msk.f32.vlgmr.msra.gmra.mxu1 %vm103_vm1, %v96_v28 }
 0x117   :  { %v124_v30 = vpop.f32.mrf.mxu1 }
 0x118   :  { %v125_v31 = vadd.f32 %v124_v30, %v101_v29 }
 0x11a   :  { %v128_v32 = vsel %vm127_vm2, %v125_v31, -inf }
 0x11b   :  { %v129_v33 = vrot.slane %v128_v32, 4 }
 0x11d   :  { %v130_v34 = vmax.f32 %v128_v32, %v129_v33 }
 0x11f   :  { %v131_v35 = vrot.slane %v130_v34, 2 }
 0x121   :  { %v132_v36 = vmax.f32 %v130_v34, %v131_v35 }
 0x123   :  { %v133_v37 = vrot.slane %v132_v36, 1 }
 0x125   :  { %v134_v38 = vmax.f32 %v132_v36, %v133_v37 }
 0x127   :  { %v135_v39 = vsub.f32 %v125_v31, %v134_v38 }
 0x129   :  { %v136_v40 = vmul.f32 1.442695, %v135_v39 }
 0x12b   :  { %178 = vpow2.f32 %v136_v40 }
 0x131   :  { %v179_v41 = vpop.eup %178 }
 0x132   :  { %v138_v42 = vsel %vm127_vm2, %v179_v41, 0.0 }
 0x133   :  { %v139_v43 = vrot.slane %v138_v42, 4 }
 0x135   :  { %v140_v44 = vadd.f32 %v139_v43, %v138_v42 }
 0x137   :  { %v141_v45 = vrot.slane %v140_v44, 2 }
 0x139   :  { %v142_v46 = vadd.f32 %v141_v45, %v140_v44 }
 0x13b   :  { %v143_v47 = vrot.slane %v142_v46, 1 }
 0x13d   :  { %v144_v48 = vadd.f32 %v143_v47, %v142_v46 }
 0x13f   :  { %180 = vrcp.f32 %v144_v48  ;;  %v156_v52 = vand.u32 2147483648, %v144_v48  ;;  %v154_v54 = vand.u32 2147483647, %v144_v48  ;;  %vm150_vm4 = vweird.f32 %v144_v48 }
 0x141   :  { %v157_v56 = vor.u32 1.1754944e-38, %v156_v52  ;;  %vm155_vm6 = vcmp.eq.f32.partialorder %v154_v54, 8.507059e+37 }
 0x145   :  { %v181_v49 = vpop.eup %180 }
 0x146   :  { %v146_v50 = vmul.f32 %v181_v49, %v144_v48  ;;  %vm151_vm3 = vweird.f32 %v181_v49 }
 0x147   :  { %vm152_vm5 = vmor %vm150_vm4, %vm151_vm3 }
 0x148   :  { %v147_v51 = vsub.f32 1.0, %v146_v50 }
 0x14a   :  { %v148_v53 = vmul.f32 %v181_v49, %v147_v51 }
 0x14c   :  { %v149_v55 = vadd.f32 %v181_v49, %v148_v53 }
 0x14e   :  { %v153_v57 = vsel %vm152_vm5, %v181_v49, %v149_v55 }
 0x14f   :  { %v158_v58 = vsel %vm155_vm6, %v157_v56, %v153_v57 }
 0x150   :  { %v159_v59 = vmul.f32 %v179_v41, %v158_v58 }
 0x152   :  { %160 = vst.msk [vmem:[%s264_s5] sm:$0xff] %vm127_vm2, %v159_v59 }

</bundles_post_ra>
